<compile_context>
chip_gen: v7x
topology: tpu7x:2x2x1
jax: 0.10.0
libtpu: 0.0.40
codegen_flags: <defaults>
</compile_context>

<pallas_src>
import jax
import jax.numpy as jnp
from jax.experimental import pallas as pl
from jax.experimental.pallas import tpu as pltpu


def _ce_head_kernel(x_ref, lbl_ref, w_ref, b_ref, out_ref):
    # x_ref:   (C, TN)  f32   channels on sublanes, pixels on lanes
    # lbl_ref: (1, TN)  i32   lane-dense labels
    # w_ref:   (K, C)   f32   nn.Conv2d layout, constant index_map -> stays resident
    # b_ref:   (K, 1)   f32
    # out_ref: (1, TN)  f32   per-batch per-lane partial sums, resident across pixel tiles
    t = pl.program_id(1)

    @pl.when(t == 0)
    def _():
        out_ref[...] = jnp.zeros_like(out_ref)

    x = x_ref[...].astype(jnp.float32)            # (C, TN)
    w = w_ref[...]                                # (K, C)
    b = b_ref[...]                                # (K, 1)
    C, TN = x.shape
    K = w.shape[0]

    # 1x1 conv on the VPU: logits[k, p] = sum_c w[k, c] * x[c, p] + b[k]
    logits = w[:, 0:1] * x[0:1, :] + b            # (K, TN)
    for c in range(1, C):                         # static unroll, C is tiny
        logits = logits + w[:, c:c + 1] * x[c:c + 1, :]

    # numerically stable softmax cross-entropy, pixels on lanes
    m = jnp.max(logits, axis=0, keepdims=True)                               # (1, TN)
    lse = m + jnp.log(jnp.sum(jnp.exp(logits - m), axis=0, keepdims=True))   # (1, TN)

    classes = jax.lax.broadcasted_iota(jnp.int32, (K, TN), 0)                # (K, TN)
    onehot = classes == lbl_ref[...]                                         # (K, TN)
    lbl_logit = jnp.sum(jnp.where(onehot, logits, 0.0), axis=0, keepdims=True)

    out_ref[...] += lse - lbl_logit


def semantic_branch_forward(x, s, weight, bias, *, tile_n=8192):
    """x: (B, C, Y, Z) activations, s: (B, 1, Hs, Ws) integer label map.
    weight: (K, C), bias: (K,)  (nn.Conv2d 1x1 layout).
    Returns {'loss_ce_ss_256': scalar} (mean softmax CE, PyTorch default reduction)."""
    B, C, Y, Z = x.shape
    K = weight.shape[0]
    Hs, Ws = s.shape[2], s.shape[3]
    P = Y * Z
    N = B * P

    # pixel tile: as big as possible (amortize per-step overhead), lane aligned
    if P <= tile_n:
        tile = P
    else:
        assert P % tile_n == 0 and tile_n % 128 == 0, \
            "tile_n must be a multiple of 128 that divides Y*Z"
        tile = tile_n
    grid = (B, P // tile)

    # x stays NCHW: free reshape only (no activation transpose / extra HBM traffic)
    xr = x.reshape(B, C, P)

    # nearest-resize labels (matches F.interpolate(mode='nearest')) and express them in
    # x's native (y, z) pixel order: lbl[b, y, z] = s[b, 0, (z*Hs)//Z, (y*Ws)//Y]
    iz = (jnp.arange(Z) * Hs) // Z
    iy = (jnp.arange(Y) * Ws) // Y
    s0 = s[:, 0].astype(jnp.int32)                 # (B, Hs, Ws)
    lbl = s0[:, iz, :][:, :, iy]                   # (B, Z, Y)
    lbl = jnp.transpose(lbl, (0, 2, 1))            # (B, Y, Z)  -- tiny int32 transpose only
    lbl = lbl.reshape(B, 1, P)

    w = weight.astype(jnp.float32)                 # (K, C)  Conv2d layout, no transpose
    bvec = bias.reshape(K, 1).astype(jnp.float32)  # (K, 1)

    cost = pl.CostEstimate(
        flops=int(2 * N * C * K + 6 * N * K),
        transcendentals=int(N * (K + 1)),
        bytes_accessed=int(N * (C * x.dtype.itemsize + 4) + B * tile * 4 + K * (C + 1) * 4),
    )

    partial = pl.pallas_call(
        _ce_head_kernel,
        out_shape=jax.ShapeDtypeStruct((B, 1, tile), jnp.float32),
        grid_spec=pltpu.PrefetchScalarGridSpec(
            num_scalar_prefetch=0,
            grid=grid,
            in_specs=[
                pl.BlockSpec((None, C, tile), lambda b, t: (b, 0, t)),   # x (C, tile)
                pl.BlockSpec((None, 1, tile), lambda b, t: (b, 0, t)),   # labels (1, tile)
                pl.BlockSpec((K, C), lambda b, t: (0, 0)),               # weight, resident
                pl.BlockSpec((K, 1), lambda b, t: (0, 0)),               # bias, resident
            ],
            out_specs=pl.BlockSpec((None, 1, tile), lambda b, t: (b, 0, 0)),
        ),
        compiler_params=pltpu.CompilerParams(
            dimension_semantics=("parallel", "arbitrary"),
            vmem_limit_bytes=32 * 1024 * 1024,
        ),
        cost_estimate=cost,
    )(xr, lbl, w, bvec)

    # TODO(synk): F.cross_entropy's default ignore_index=-100 masking is not implemented
    # (the original module never produces ignore pixels from the resized label map).
    loss = jnp.sum(partial) / jnp.float32(N)       # mean reduction (PyTorch default)
    return {"loss_ce_ss_256": loss}


def _reference(x, s, weight, bias):
    # pure-JAX reference of the PyTorch forward, for a sanity check
    B, C, Y, Z = x.shape
    xt = jnp.transpose(x, (0, 1, 3, 2))            # 'b c y z -> b c z y'
    H, W = Z, Y
    Hs, Ws = s.shape[2], s.shape[3]
    ih = (jnp.arange(H) * Hs) // H
    iw = (jnp.arange(W) * Ws) // W
    lbl = s[:, 0][:, ih][:, :, iw]                 # (B, H, W) nearest-resize
    logits = jnp.einsum("bchw,kc->bkhw", xt, weight) + bias[None, :, None, None]
    logits = jnp.transpose(logits, (0, 2, 3, 1)).reshape(-1, weight.shape[0])
    lbl = lbl.reshape(-1)
    lse = jax.scipy.special.logsumexp(logits, axis=-1)
    picked = jnp.take_along_axis(logits, lbl[:, None], axis=-1)[:, 0]
    return jnp.mean(lse - picked)


if __name__ == "__main__":
    in_channels, num_classes = 4, 5
    B, Y, Z = 2, 16, 16          # x: (B, C, Y, Z); pixels N = 2*16*16 = 512
    Hs, Ws = 8, 8                # label map before nearest-resize

    key = jax.random.PRNGKey(0)
    kx, ks, kw, kb = jax.random.split(key, 4)
    x = jax.random.normal(kx, (B, in_channels, Y, Z), dtype=jnp.float32)
    s = jax.random.randint(ks, (B, 1, Hs, Ws), 0, num_classes, dtype=jnp.int32)

    # deterministic 1x1-conv params (nn.Conv2d(in_channels, num_classes, 1))
    weight = 0.1 * jax.random.normal(kw, (num_classes, in_channels), dtype=jnp.float32)
    bias = 0.1 * jax.random.normal(kb, (num_classes,), dtype=jnp.float32)

    out = semantic_branch_forward(x, s, weight, bias)
    loss = jax.block_until_ready(out["loss_ce_ss_256"])

    ref = _reference(x, s, weight, bias)
    assert jnp.allclose(loss, ref, rtol=1e-5, atol=1e-5), (loss, ref)
    print("KERNEL_OK")
</pallas_src>

<mosaic_0001>
module attributes {stable_mosaic.version = 11 : i64} {
  func.func @_ce_head_kernel(%arg0: i32, %arg1: i32, %arg2: memref<1x4x256xf32, #tpu.memory_space<vmem>>, %arg3: memref<1x1x256xi32, #tpu.memory_space<vmem>>, %arg4: memref<5x4xf32, #tpu.memory_space<vmem>>, %arg5: memref<5x1xf32, #tpu.memory_space<vmem>>, %arg6: memref<1x1x256xf32, #tpu.memory_space<vmem>>) attributes {dimension_semantics = [#tpu.dimension_semantics<parallel>, #tpu.dimension_semantics<arbitrary>], iteration_bounds = array<i64: 2, 1>, scalar_prefetch = 0 : i64, scratch_operands = 0 : i64, tpu.core_type = #tpu.core_type<tc>, window_params = [{transform_indices = @transform_0, window_bounds = array<i64: 1, 4, 256>}, {transform_indices = @transform_1, window_bounds = array<i64: 1, 1, 256>}, {pipeline_mode = #tpu.pipeline_mode<synchronous>, transform_indices = @transform_2, window_bounds = array<i64: 5, 4>}, {pipeline_mode = #tpu.pipeline_mode<synchronous>, transform_indices = @transform_3, window_bounds = array<i64: 5, 1>}, {transform_indices = @transform_4, window_bounds = array<i64: 1, 1, 256>}]} {
    %c0_i32 = arith.constant 0 : i32
    %0 = arith.cmpi eq, %arg1, %c0_i32 : i32
    %1 = arith.extui %0 : i1 to i32
    %c0_i32_0 = arith.constant 0 : i32
    %2 = arith.cmpi ne, %1, %c0_i32_0 : i32
    scf.if %2 {
      %cst_19 = arith.constant 0.000000e+00 : f32
      %57 = vector.broadcast %cst_19 : f32 to vector<1x256xf32>
      %c0_20 = arith.constant 0 : index
      %c0_21 = arith.constant 0 : index
      %c0_22 = arith.constant 0 : index
      %58 = vector.load %arg6[%c0_20, %c0_21, %c0_22] : memref<1x1x256xf32, #tpu.memory_space<vmem>>, vector<1x1x256xf32>
      %59 = vector.shape_cast %58 : vector<1x1x256xf32> to vector<1x256xf32>
      %60 = vector.shape_cast %57 : vector<1x256xf32> to vector<1x1x256xf32>
      tpu.vector_store %arg6[%c0_20, %c0_21, %c0_22], %60 {strides = array<i32>} : memref<1x1x256xf32, #tpu.memory_space<vmem>>, vector<1x1x256xf32>,
    } else {
    }
    %c0 = arith.constant 0 : index
    %c0_1 = arith.constant 0 : index
    %c0_2 = arith.constant 0 : index
    %3 = vector.load %arg2[%c0, %c0_1, %c0_2] : memref<1x4x256xf32, #tpu.memory_space<vmem>>, vector<1x4x256xf32>
    %4 = vector.shape_cast %3 : vector<1x4x256xf32> to vector<4x256xf32>
    %c0_3 = arith.constant 0 : index
    %c0_4 = arith.constant 0 : index
    %5 = vector.load %arg4[%c0_3, %c0_4] : memref<5x4xf32, #tpu.memory_space<vmem>>, vector<5x4xf32>
    %c0_5 = arith.constant 0 : index
    %c0_6 = arith.constant 0 : index
    %6 = vector.load %arg5[%c0_5, %c0_6] : memref<5x1xf32, #tpu.memory_space<vmem>>, vector<5x1xf32>
    %7 = vector.extract_strided_slice %5 {offsets = [0, 0], sizes = [5, 1], strides = [1, 1]} : vector<5x4xf32> to vector<5x1xf32>
    %8 = vector.extract_strided_slice %4 {offsets = [0, 0], sizes = [1, 256], strides = [1, 1]} : vector<4x256xf32> to vector<1x256xf32>
    %9 = vector.broadcast %7 : vector<5x1xf32> to vector<5x256xf32>
    %10 = vector.broadcast %8 : vector<1x256xf32> to vector<5x256xf32>
    %11 = arith.mulf %9, %10 : vector<5x256xf32>
    %12 = vector.broadcast %6 : vector<5x1xf32> to vector<5x256xf32>
    %13 = arith.addf %11, %12 : vector<5x256xf32>
    %14 = vector.extract_strided_slice %5 {offsets = [0, 1], sizes = [5, 1], strides = [1, 1]} : vector<5x4xf32> to vector<5x1xf32>
    %15 = vector.extract_strided_slice %4 {offsets = [1, 0], sizes = [1, 256], strides = [1, 1]} : vector<4x256xf32> to vector<1x256xf32>
    %16 = vector.broadcast %14 : vector<5x1xf32> to vector<5x256xf32>
    %17 = vector.broadcast %15 : vector<1x256xf32> to vector<5x256xf32>
    %18 = arith.mulf %16, %17 : vector<5x256xf32>
    %19 = arith.addf %13, %18 : vector<5x256xf32>
    %20 = vector.extract_strided_slice %5 {offsets = [0, 2], sizes = [5, 1], strides = [1, 1]} : vector<5x4xf32> to vector<5x1xf32>
    %21 = vector.extract_strided_slice %4 {offsets = [2, 0], sizes = [1, 256], strides = [1, 1]} : vector<4x256xf32> to vector<1x256xf32>
    %22 = vector.broadcast %20 : vector<5x1xf32> to vector<5x256xf32>
    %23 = vector.broadcast %21 : vector<1x256xf32> to vector<5x256xf32>
    %24 = arith.mulf %22, %23 : vector<5x256xf32>
    %25 = arith.addf %19, %24 : vector<5x256xf32>
    %26 = vector.extract_strided_slice %5 {offsets = [0, 3], sizes = [5, 1], strides = [1, 1]} : vector<5x4xf32> to vector<5x1xf32>
    %27 = vector.extract_strided_slice %4 {offsets = [3, 0], sizes = [1, 256], strides = [1, 1]} : vector<4x256xf32> to vector<1x256xf32>
    %28 = vector.broadcast %26 : vector<5x1xf32> to vector<5x256xf32>
    %29 = vector.broadcast %27 : vector<1x256xf32> to vector<5x256xf32>
    %30 = arith.mulf %28, %29 : vector<5x256xf32>
    %31 = arith.addf %25, %30 : vector<5x256xf32>
    %cst = arith.constant dense<0xFF800000> : vector<256xf32>
    %32 = vector.multi_reduction <maximumf>, %31, %cst [0] : vector<5x256xf32> to vector<256xf32>
    %33 = vector.shape_cast %32 : vector<256xf32> to vector<1x256xf32>
    %34 = vector.broadcast %33 : vector<1x256xf32> to vector<5x256xf32>
    %35 = arith.subf %31, %34 : vector<5x256xf32>
    %36 = math.exp %35 : vector<5x256xf32>
    %cst_7 = arith.constant dense<0.000000e+00> : vector<256xf32>
    %37 = vector.multi_reduction <add>, %36, %cst_7 [0] : vector<5x256xf32> to vector<256xf32>
    %38 = vector.shape_cast %37 : vector<256xf32> to vector<1x256xf32>
    %39 = math.log %38 : vector<1x256xf32>
    %40 = arith.addf %33, %39 : vector<1x256xf32>
    %41 = tpu.iota {dimensions = array<i32: 0>} : vector<5x256xi32>
    %c0_8 = arith.constant 0 : index
    %c0_9 = arith.constant 0 : index
    %c0_10 = arith.constant 0 : index
    %42 = vector.load %arg3[%c0_8, %c0_9, %c0_10] : memref<1x1x256xi32, #tpu.memory_space<vmem>>, vector<1x1x256xi32>
    %43 = vector.shape_cast %42 : vector<1x1x256xi32> to vector<1x256xi32>
    %44 = vector.broadcast %43 : vector<1x256xi32> to vector<5x256xi32>
    %45 = arith.cmpi eq, %41, %44 : vector<5x256xi32>
    %cst_11 = arith.constant 0.000000e+00 : f32
    %46 = vector.broadcast %cst_11 : f32 to vector<5x256xf32>
    %47 = arith.select %45, %31, %46 : vector<5x256xi1>, vector<5x256xf32>
    %cst_12 = arith.constant dense<0.000000e+00> : vector<256xf32>
    %48 = vector.multi_reduction <add>, %47, %cst_12 [0] : vector<5x256xf32> to vector<256xf32>
    %49 = vector.shape_cast %48 : vector<256xf32> to vector<1x256xf32>
    %c0_13 = arith.constant 0 : index
    %c0_14 = arith.constant 0 : index
    %c0_15 = arith.constant 0 : index
    %50 = vector.load %arg6[%c0_13, %c0_14, %c0_15] : memref<1x1x256xf32, #tpu.memory_space<vmem>>, vector<1x1x256xf32>
    %51 = vector.shape_cast %50 : vector<1x1x256xf32> to vector<1x256xf32>
    %52 = arith.subf %40, %49 : vector<1x256xf32>
    %53 = arith.addf %51, %52 : vector<1x256xf32>
    %c0_16 = arith.constant 0 : index
    %c0_17 = arith.constant 0 : index
    %c0_18 = arith.constant 0 : index
    %54 = vector.load %arg6[%c0_16, %c0_17, %c0_18] : memref<1x1x256xf32, #tpu.memory_space<vmem>>, vector<1x1x256xf32>
    %55 = vector.shape_cast %54 : vector<1x1x256xf32> to vector<1x256xf32>
    %56 = vector.shape_cast %53 : vector<1x256xf32> to vector<1x1x256xf32>
    tpu.vector_store %arg6[%c0_16, %c0_17, %c0_18], %56 {strides = array<i32>} : memref<1x1x256xf32, #tpu.memory_space<vmem>>, vector<1x1x256xf32>,
    return
  }
  func.func @transform_0(%arg0: i32, %arg1: i32) -> (i32, i32, i32) {
    %c0_i32 = arith.constant 0 : i32
    %c0_i32_0 = arith.constant 0 : i32
    return %arg0, %c0_i32, %arg1 : i32, i32, i32
  }
  func.func @transform_1(%arg0: i32, %arg1: i32) -> (i32, i32, i32) {
    %c0_i32 = arith.constant 0 : i32
    %c0_i32_0 = arith.constant 0 : i32
    return %arg0, %c0_i32, %arg1 : i32, i32, i32
  }
  func.func @transform_2(%arg0: i32, %arg1: i32) -> (i32, i32) {
    %c0_i32 = arith.constant 0 : i32
    %c0_i32_0 = arith.constant 0 : i32
    %c0_i32_1 = arith.constant 0 : i32
    return %c0_i32, %c0_i32_0 : i32, i32
  }
  func.func @transform_3(%arg0: i32, %arg1: i32) -> (i32, i32) {
    %c0_i32 = arith.constant 0 : i32
    %c0_i32_0 = arith.constant 0 : i32
    %c0_i32_1 = arith.constant 0 : i32
    return %c0_i32, %c0_i32_0 : i32, i32
  }
  func.func @transform_4(%arg0: i32, %arg1: i32) -> (i32, i32, i32) {
    %c0_i32 = arith.constant 0 : i32
    %c0_i32_0 = arith.constant 0 : i32
    %c0_i32_1 = arith.constant 0 : i32
    return %arg0, %c0_i32, %c0_i32_0 : i32, i32, i32
  }
}

</mosaic_0001>

<bundles_post_ra>
// kernel: tpu_custom_call.1
= control target key start
LH: loop header
LB: loop body
LE: loop exit
PB: predicated region body
PF: predicated region fallthrough
CT: control target
= control target key end

     0   :  { %9 = vsyncpa [#allocation3], 0  ;;  %s955_s0 = inlined_call_operand.vmem [shape: f32[2,4,256], index: 0, kind: input, shape index: {}]   ;;  %s956_s1 = inlined_call_operand.vmem [shape: s32[2,1,256], index: 1, kind: input, shape index: {}]   ;;  %s957_s2 = inlined_call_operand.vmem [shape: f32[5,4], index: 2, kind: input, shape index: {}]   ;;  %s958_s3 = inlined_call_operand.vmem [shape: f32[5,1], index: 3, kind: input, shape index: {}]   ;;  %s959_s4 = inlined_call_operand.hbm [shape: f32[2,1,256], index: 4, kind: output, shape index: {}]  }
   0x1   :  { %11 = vsyncpa [#allocation3 + $0x1], 0  ;;  %s781_s15 = smov 0   ;;  %s783_s16 = smov 0  }
   0x2   :  { %s785_s17 = smov 0   ;;  %s787_s18 = smov 0  }
   0x3   :  { %s789_s19 = smov 0   ;;  %s791_s20 = smov 0  }
   0x4 LB: > { %s580_s21 = sadd.s32 4294967295, %s747_s20   ;;  %s581_s22 = sadd.s32 4294967294, %s747_s20   ;;  %s747_s20 = sphi %s791_s20, %s17_s20   ;;  %s743_s19 = sphi %s789_s19, %s968_s19   ;;  %s739_s18 = sphi %s787_s18, %s967_s18   ;;  %s735_s17 = sphi %s785_s17, %s966_s17   ;;  %s731_s16 = sphi %s783_s16, %s965_s16   ;;  %s727_s15 = sphi %s781_s15, %s964_s15  }
   0x5   : > { %s29_s23 = sadd.s32 1, %s743_s19  ;;  %s134_s24 = sadd.s32 1, %s735_s17 }
   0x6   : > { %p31_p0 = scmp.ge.s32.totalorder %s29_s23, 2  ;;  %p144_p1 = scmp.ne.s32.totalorder %s735_s17, %s731_s16 }
   0x7   : > { %p145_p2 = scmp.eq.s32.totalorder %s580_s21, 1  ;;  %p150_p3 = scmp.ne.s32.totalorder %s731_s16, %s727_s15 }
   0x8   : > { %s970_s23 = smov (%p31_p0, %s29_s23), 0  ;;  %p151_p5 = scmp.eq.s32.totalorder %s581_s22, 1 }
   0x9   : > { %p821_p4 = por %p145_p2, %p144_p1  ;;  %s131_s26 = ssub.s32 %s743_s19, %s970_s23 }
   0xa   : > { %p584_p6 = scmp.ge.s32.totalorder %s747_s20, 1  ;;  %p132_p7 = scmp.eq.s32.totalorder %s131_s26, 0 }
   0xb   : > { %p828_p8 = por %p151_p5, %p150_p3  ;;  %p200_p9 = scmp.lt.s32.totalorder %s747_s20, 3 }
   0xc   : > { %s834_s28 = scalar_select %p132_p7, %s735_s17, %s134_s24  }
   0xd   : > { %p201_p10 = pnand %p584_p6, %p200_p9 }
   0xe   : > { %v267_v0 = vld [vmem:[%s957_s2] sm:$0x1f] (!%p201_p10)  ;;  %v749_v1 = vmov (!%p201_p10), 0   ;;  %v750_v2 = vmov (!%p201_p10), 1   ;;  %v751_v4 = vmov (!%p201_p10), 2   ;;  %v752_v5 = vmov (!%p201_p10), 3  }
   0xf   : > { %204 = sbr.rel (%p201_p10) target bundleno = 238 (0xee), region = 36  ;;  %657 = vset.pattern.permute.xlu0 (!%p201_p10), %v749_v1  ;;  %658 = vset.pattern.permute.xlu1 (!%p201_p10), %v750_v2  ;;  %v268_v3 = vld [vmem:[%s958_s3] sm:$0x1f] (!%p201_p10)  ;;  %v261_v6 = vlaneseq (!%p201_p10)  ;;  %s235_s7 = sand.u32 (!%p201_p10), 1, %s731_s16   ;;  %v753_v8 = vmov (!%p201_p10), 0.0   ;;  %vm380_vm1 = vcmask (!%p201_p10), 1044480  }
  0x10   : > { %271 = vperm.xlu0 (!%p201_p10), %657, %v267_v0   ;;  %303 = vperm.xlu1 (!%p201_p10), %658, %v267_v0   ;;  %s585_s8 = sshll.u32 (!%p201_p10), %s235_s7, 1  ;;  %p239_p11 = scmp.lt.s32.totalorder (!%p201_p10), %s739_s18, 1 }
  0x11   : > { %vm845_vm0 = vcmp.lt.s32.totalorder (!%p201_p10), %v261_v6, 256  ;;  %s849_s9 = scalar_lea.vmem (!%p201_p10), [#allocation2], %s585_s8  ;;  %v859_v9 = vshrl.u32 (!%p201_p10), %v261_v6, 7  ;;  %s595_s29 = sshll.u32 (!%p201_p10), %s739_s18, 5 }
  0x12   : > { %265 = vst.msk [vmem:[%s849_s9] sm:$0x3] (!%p201_p10), %vm845_vm0, %v753_v8  ;;  %s492_s30 = sshll.u32 (!%p201_p10), %s849_s9, 4  ;;  %s903_s8 = scalar_lea.hbm (!%p201_p10), %s959_s4, %s595_s29  ;;  %s905_s30 = int_to_ptr.vmem [resolvable:$true] %s492_s30 }
  0x13   : > { %v865_v10 = vsub.s32 (!%p201_p10), 0, %v859_v9  ;;  %v281_v11 = vsub.s32 (!%p201_p10), 4, %v859_v9  ;;  %v869_v13 = vsub.s32 (!%p201_p10), 1, %v859_v9  ;;  %v312_v14 = vsub.s32 (!%p201_p10), 5, %v859_v9 }
  0x14   : > { %297 = vperm.xlu0 (!%p201_p10), %657, %v268_v3   ;;  %659 = vset.pattern.permute.xlu1 (!%p201_p10), %v751_v4  ;;  %v334_v15 = vsub.s32 (!%p201_p10), 2, %v859_v9  ;;  %v338_v16 = vsub.s32 (!%p201_p10), 6, %v859_v9  ;;  %v360_v23 = vsub.s32 (!%p201_p10), 3, %v859_v9  ;;  %v364_v24 = vsub.s32 (!%p201_p10), 7, %v859_v9 }
  0x15   : > { %329 = vperm.xlu1 (!%p201_p10), %659, %v267_v0  }
  0x16   : > { %s856_s10 = scalar_select %p239_p11, %s739_s18, 1 }
  0x17   : > { %s755_s18 = smov [#allocation2]  }
  0x18   : > { %660 = vset.pattern.permute.xlu0 %v752_v5  ;;  %s594_s11 = sshll.u32 %s856_s10, 3  ;;  %s588_s21 = sshll.u32 %s856_s10, 1 }
  0x19   : > { %355 = vperm.xlu0 %660, %v267_v0   ;;  %s246_s14 = scalar_lea.vmem %s955_s0, %s594_s11  ;;  %s255_s26 = scalar_lea.vmem %s956_s1, %s588_s21 }
  0x1a   : > { %v266_v12 = vld [vmem:[%s246_s14] sm:$0xff]  ;;  %s478_s10 = scalar_lea.sflag [#allocation3], %s235_s7  ;;  %s669_s11 = scalar_lea.vmem %s905_s30, 32 }
  0x1b   : > { %v278_v17 = vrot.slane %v266_v12, %v865_v10  ;;  %v282_v18 = vrot.slane %v266_v12, %v281_v11  ;;  %v309_v19 = vrot.slane %v266_v12, %v869_v13  ;;  %v313_v20 = vrot.slane %v266_v12, %v312_v14  ;;  %v423_v14 = vld [vmem:[%s255_s26] sm:$0x3]  ;;  %p670_p12 = scmp.ne.s32.totalorder %s905_s30, %s669_s11  ;;  %s673_s12 = sshll.u32 %s755_s18, 4  ;;  %s674_s12 = int_to_ptr.vmem [resolvable:$false] %s673_s12 }
  0x1c   : > { %v335_v21 = vrot.slane %v266_v12, %v334_v15  ;;  %v339_v22 = vrot.slane %v266_v12, %v338_v16  ;;  %v361_v33 = vrot.slane %v266_v12, %v360_v23  ;;  %v365_v34 = vrot.slane %v266_v12, %v364_v24  ;;  %s675_s13 = scalar_lea.vmem %s674_s12, 64  ;;  %p676_p1 = scmp.lt.s32.totalorder %s905_s30, %s674_s12 }
  0x1d   : > { %v288_v25 = vrot.slane %v278_v17, %v865_v10  ;;  %v292_v26 = vrot.slane %v282_v18, %v865_v10  ;;  %v319_v29 = vrot.slane %v309_v19, %v869_v13  ;;  %v323_v30 = vrot.slane %v313_v20, %v869_v13  ;;  %p671_p13 = pnand %p670_p12, %p821_p4  ;;  %p677_p2 = scmp.lt.s32.totalorder %s675_s13, %s669_s11 }
  0x1e   : > { %v345_v31 = vrot.slane %v335_v21, %v334_v15  ;;  %v349_v32 = vrot.slane %v339_v22, %v334_v15  ;;  %v371_v45 = vrot.slane %v361_v33, %v360_v23  ;;  %v375_v46 = vrot.slane %v365_v34, %v360_v23 }
  0x1f   : > { %v427_v15 = vrot.slane %v423_v14, %v865_v10  ;;  %v431_v16 = vrot.slane %v423_v14, %v869_v13  ;;  %p672_p0 = pneg %p671_p13  ;;  %p678_p3 = por %p677_p2, %p676_p1 }
  0x21   : > { %vm432_vm2 = vcmp.eq.s32.totalorder %v859_v9, %v427_v15  ;;  %vm433_vm3 = vcmp.eq.s32.totalorder %v859_v9, %v431_v16  ;;  %p679_p5 = pnand %p678_p3, %p672_p0 }
  0x8f   : > { %v272_v27 = vpop.permute.xlu0 %271  ;;  %v304_v28 = vpop.permute.xlu1 %303 }
  0x90   : > { %v293_v35 = vmul.f32 %v288_v25, %v272_v27  ;;  %v294_v36 = vmul.f32 %v292_v26, %v272_v27  ;;  %v324_v38 = vmul.f32 %v319_v29, %v304_v28  ;;  %v325_v39 = vmul.f32 %v323_v30, %v304_v28 }
  0x93   : > { %v298_v37 = vpop.permute.xlu0 %297 }
  0x94   : > { %v300_v40 = vadd.f32 %v298_v37, %v293_v35  ;;  %v301_v41 = vadd.f32 %v298_v37, %v294_v36  ;;  %v330_v42 = vpop.permute.xlu1 %329 }
  0x95   : > { %v350_v43 = vmul.f32 %v345_v31, %v330_v42  ;;  %v351_v44 = vmul.f32 %v349_v32, %v330_v42 }
  0x96   : > { %v326_v47 = vadd.f32 %v324_v38, %v300_v40  ;;  %v327_v48 = vadd.f32 %v325_v39, %v301_v41 }
  0x98   : > { %v352_v49 = vadd.f32 %v350_v43, %v326_v47  ;;  %v353_v50 = vadd.f32 %v351_v44, %v327_v48  ;;  %v356_v51 = vpop.permute.xlu0 %355  ;;  %v754_v43 = vmov 1966171168  }
  0x99   : > { %v376_v52 = vmul.f32 %v371_v45, %v356_v51  ;;  %v377_v53 = vmul.f32 %v375_v46, %v356_v51  ;;  %v457_v44 = vunpack.c.l.s4 %v754_v43 }
  0x9b   : > { %v378_v54 = vadd.f32 %v376_v52, %v352_v49  ;;  %v379_v55 = vadd.f32 %v377_v53, %v353_v50  ;;  %v458_v51 = vunpack.c.0.s8 %v457_v44 }
  0x9d   : > { %v381_v56 = vsel %vm380_vm1, %v378_v54, -inf  ;;  %v388_v57 = vsel %vm380_vm1, %v379_v55, -inf  ;;  %v434_v20 = vsel %vm432_vm2, %v378_v54, 0.0  ;;  %v435_v23 = vsel %vm433_vm3, %v379_v55, 0.0 }
  0x9e   : > { %v382_v58 = vrot.slane %v381_v56, 4  ;;  %v389_v59 = vrot.slane %v388_v57, 4  ;;  %v436_v26 = vsel %vm380_vm1, %v434_v20, 0.0  ;;  %v443_v13 = vsel %vm380_vm1, %v435_v23, 0.0 }
  0x9f   : > { %v437_v29 = vrot.slane %v436_v26, 4  ;;  %v444_v31 = vrot.slane %v443_v13, 4 }
  0xa0   : > { %v383_v60 = vmax.f32 %v381_v56, %v382_v58  ;;  %v390_v61 = vmax.f32 %v388_v57, %v389_v59  ;;  %v461_v58 = vsub.s32 %v458_v51, %v859_v9 }
  0xa1   : > { %v438_v35 = vadd.f32 %v437_v29, %v436_v26  ;;  %v445_v37 = vadd.f32 %v444_v31, %v443_v13 }
  0xa2   : > { %v384_v62 = vrot.slane %v383_v60, 2  ;;  %v391_v63 = vrot.slane %v390_v61, 2 }
  0xa3   : > { %v439_v39 = vrot.slane %v438_v35, 2  ;;  %v446_v40 = vrot.slane %v445_v37, 2 }
  0xa4   : > { %v385_v0 = vmax.f32 %v383_v60, %v384_v62  ;;  %v392_v1 = vmax.f32 %v390_v61, %v391_v63  ;;  %v450_v61 = vld [vmem:[%s849_s9] sm:$0x3] }
  0xa5   : > { %v440_v41 = vadd.f32 %v439_v39, %v438_v35  ;;  %v447_v42 = vadd.f32 %v446_v40, %v445_v37 }
  0xa6   : > { %v386_v2 = vrot.slane %v385_v0, 1  ;;  %v393_v3 = vrot.slane %v392_v1, 1 }
  0xa7   : > { %v441_v45 = vrot.slane %v440_v41, 1  ;;  %v448_v47 = vrot.slane %v447_v42, 1 }
  0xa8   : > { %v387_v4 = vmax.f32 %v385_v0, %v386_v2  ;;  %v394_v5 = vmax.f32 %v392_v1, %v393_v3 }
  0xa9   : > { %v442_v53 = vadd.f32 %v441_v45, %v440_v41 }
  0xaa   : > { %v395_v6 = vsub.f32 %v378_v54, %v387_v4  ;;  %v396_v8 = vsub.f32 %v379_v55, %v394_v5  ;;  %v449_v55 = vadd.f32 %v448_v47, %v447_v42 }
  0xac   : > { %v397_v11 = vmul.f32 1.442695, %v395_v6  ;;  %v399_v12 = vmul.f32 1.442695, %v396_v8 }
  0xae   : > { %661 = vpow2.f32 %v397_v11 }
  0xaf   : > { %663 = vpow2.f32 %v399_v12 }
  0xb8   : > { %v662_v17 = vpop.eup %661 }
  0xb9   : > { %v664_v18 = vpop.eup %663  ;;  %v401_v19 = vsel %vm380_vm1, %v662_v17, 0.0 }
  0xba   : > { %v402_v21 = vrot.slane %v401_v19, 4  ;;  %v408_v22 = vsel %vm380_vm1, %v664_v18, 0.0 }
  0xbb   : > { %v409_v24 = vrot.slane %v408_v22, 4 }
  0xbc   : > { %v403_v25 = vadd.f32 %v402_v21, %v401_v19 }
  0xbd   : > { %v410_v10 = vadd.f32 %v409_v24, %v408_v22 }
  0xbe   : > { %v404_v27 = vrot.slane %v403_v25, 2 }
  0xbf   : > { %v411_v28 = vrot.slane %v410_v10, 2 }
  0xc0   : > { %v405_v30 = vadd.f32 %v404_v27, %v403_v25 }
  0xc1   : > { %v412_v32 = vadd.f32 %v411_v28, %v410_v10 }
  0xc2   : > { %v406_v33 = vrot.slane %v405_v30, 1 }
  0xc3   : > { %v413_v34 = vrot.slane %v412_v32, 1 }
  0xc4   : > { %v407_v36 = vadd.f32 %v406_v33, %v405_v30 }
  0xc5   : > { %v414_v38 = vadd.f32 %v413_v34, %v412_v32 }
  0xc6   : > { %665 = vlog2.f32 %v407_v36 }
  0xc7   : > { %667 = vlog2.f32 %v414_v38 }
  0xd0   : > { %v666_v46 = vpop.eup %665 }
  0xd1   : > { %v668_v48 = vpop.eup %667  ;;  %v416_v49 = vmul.f32 0.6931472, %v666_v46 }
  0xd2   : > { %v418_v50 = vmul.f32 0.6931472, %v668_v48 }
  0xd3   : > { %v419_v52 = vadd.f32 %v416_v49, %v387_v4 }
  0xd4   : > { %v420_v54 = vadd.f32 %v418_v50, %v394_v5 }
  0xd5   : > { %v451_v56 = vsub.f32 %v419_v52, %v442_v53 }
  0xd6   : > { %v452_v57 = vsub.f32 %v420_v54, %v449_v55 }
  0xd8   : > { %v455_v59 = vcombine.low %v451_v56, %v452_v57 }
  0xda   : > { %v462_v60 = vrot.slane %v455_v59, %v461_v58 }
  0xdc   : > { %v469_v62 = vrot.slane %v462_v60, %v461_v58 }
  0xde   : > { %v471_v63 = vadd.f32 %v469_v62, %v450_v61 }
  0xe0   : > { %476 = vst.msk [vmem:[%s849_s9] sm:$0x3] %vm845_vm0, %v471_v63 }
  0xe1   : > { %682 = shalt.err (!%p679_p5)
}
  0xe2   : > { %s683_s7 = scalar_lea.hbm %s903_s8, 32  ;;  %s687_s21 = scalar_lea.hbm %s959_s4, 64 }
  0xe3   : > { %p684_p6 = scmp.ne.s32.totalorder %s903_s8, %s683_s7  ;;  %p688_p10 = scmp.lt.u32.totalorder %s903_s8, %s959_s4 }
  0xe4   : > { %p689_p11 = scmp.lt.u32.totalorder %s687_s21, %s683_s7  ;;  %p691_p13 = scmp.lt.u32.totalorder %s683_s7, %s903_s8 }
  0xe5   : > { %p685_p7 = pnand %p684_p6, %p821_p4 }
  0xe6   : > { %p690_p12 = por %p689_p11, %p688_p10 }
  0xe7   : > { %p686_p9 = pneg %p685_p7 }
  0xe8   : > { %p692_p0 = por %p691_p13, %p690_p12 }
  0xea   : > { %p693_p1 = pnand %p692_p0, %p686_p9 }
  0xec   : > { %696 = shalt.err (!%p693_p1)
}
  0xed   : > { %596 = dma.vmem_to_hbm [thread:$0]  (%p821_p4), %s905_s30, 32, %s903_s8, %s478_s10  }
  0xee PF: > { %p602_p2 = scmp.ge.s32.totalorder %s747_s20, 2  ;;  %s504_s26 = sand.u32 1, %s727_s15  }
  0xef   : > { %s505_s29 = scalar_lea.sflag [#allocation3], %s504_s26 }
  0xf0   : > { %p599_p3 = pnand %p602_p2, %p828_p8 }
  0xf2   : > { %722 = dma.done.wait (!%p599_p3), %s505_s29, 32  }
  0xf3   : > { %724 = vsyncadd (!%p599_p3), %s505_s29, 4294967264  ;;  %s17_s20 = sadd.s32 1, %s747_s20   ;;  %s964_s15 = smov %s731_s16 }
  0xf4   : > { %p14_p5 = scmp.ge.s32.totalorder %s17_s20, 4   ;;  %s965_s16 = smov %s735_s17 }
  0xf5   : > { %s966_s17 = smov %s834_s28  ;;  %s967_s18 = smov %s743_s19 }
  0xf6   : > { %s968_s19 = smov %s970_s23  ;;  %16 = sbr.rel (!%p14_p5) target bundleno = 4 (0x4), region = 78 }
  0xfd   :  { %510 = vsyncpa [#allocation3], 1 }
  0xfe   :  { %512 = vsyncpa [#allocation3 + $0x1], 1 }

</bundles_post_ra>
